<compile_context>
chip_gen: v5e
topology: v5e:2x2
jax: 0.10.0
libtpu: 0.0.40
codegen_flags: <defaults>
</compile_context>

<pallas_src>
import jax
import jax.numpy as jnp
from jax.experimental import pallas as pl
from jax.experimental.pallas import tpu as pltpu


def _recog_matrix_kernel(pbig_ref, x_ref, o_ref):
    # pbig_ref: (pack*X, pack*U) block-diagonal kron(I_pack, p.T); grid-invariant (resident).
    # x_ref   : (tile_p, pack*X) packed batch tile (pack original rows per packed row).
    # o_ref   : (tile_p, pack*U) packed log-probability tile.
    acc = jnp.dot(
        x_ref[...].astype(jnp.float32),
        pbig_ref[...].astype(jnp.float32),
        preferred_element_type=jnp.float32,
    )
    o_ref[...] = jnp.log(acc).astype(o_ref.dtype)


def _round_up(v, m):
    return -(-v // m) * m


def recog_matrix_forward(mat, x, *, block_d=32768):
    """mat: (latent_dim U, obs_dim X) log-parameters; x: (batch D, obs_dim X) -> (D, U) log-probs.

    block_d: batch tile size in *original* rows.  With the packed (lane-dense) layout the
    double-buffered VMEM footprint is ~ (pack*X + pack*U) * 4 * 2 bytes per packed row
    (~3 KiB/packed row for X=16, U=32), so block_d=32768 -> ~12 MiB, well inside the
    explicit 32 MiB vmem_limit on every TPU generation.
    """
    U, X = mat.shape
    D, X2 = x.shape
    assert X == X2, "obs_dim mismatch"

    # --- parameter-side compute, hoisted out of the grid loop (runs once, O(U*X)) -------
    # Stable column softmax == exp(mat) / sum(exp(mat), axis=0).
    p = jax.nn.softmax(mat.astype(jnp.float32), axis=0)              # (U, X)

    # Lane-dense packing factor: pack rows of x per 128-lane packed row (falls back to 1
    # -> the plain (D, X) x (X, U) formulation -- when X does not divide 128).
    pack = 128 // X if (X <= 128 and 128 % X == 0) else 1
    p_big = jnp.kron(jnp.eye(pack, dtype=jnp.float32), p.T)          # (pack*X, pack*U)

    # --- pack the batch -------------------------------------------------------------------
    d_pad = _round_up(D, pack)
    if d_pad != D:
        # Pad with 1.0 so padded rows stay finite; they are sliced off below.
        x = jnp.pad(x, ((0, d_pad - D), (0, 0)), constant_values=1.0)
    x_packed = x.astype(jnp.float32).reshape(d_pad // pack, pack * X)

    # --- tile selection (in packed rows) --------------------------------------------------
    dp = d_pad // pack
    max_tile_p = max(block_d // pack, 8)
    if dp <= 16:
        tile_p = dp                                   # single full block (any size allowed)
    else:
        # Guarantee >= 2 grid steps (megacore sharding on v7x), sublane-aligned tile.
        tile_p = min(max_tile_p, _round_up(-(-dp // 2), 8))
    grid = (pl.cdiv(dp, tile_p),)

    out_packed = pl.pallas_call(
        _recog_matrix_kernel,
        out_shape=jax.ShapeDtypeStruct((dp, pack * U), jnp.float32),
        grid=grid,
        in_specs=[
            pl.BlockSpec((pack * X, pack * U), lambda i: (0, 0)),    # weights: resident
            pl.BlockSpec((tile_p, pack * X), lambda i: (i, 0)),      # packed x tile
        ],
        out_specs=pl.BlockSpec((tile_p, pack * U), lambda i: (i, 0)),
        compiler_params=pltpu.CompilerParams(
            dimension_semantics=("parallel",),        # batch tiles are independent
            vmem_limit_bytes=32 * 1024 * 1024,
        ),
        cost_estimate=pl.CostEstimate(
            flops=2 * D * U * X,
            transcendentals=D * U,
            bytes_accessed=D * (X + U) * 4 + U * X * 4,
        ),
    )(p_big, x_packed)

    out = out_packed.reshape(d_pad, U)
    return out[:D] if d_pad != D else out


def init_recog_matrix_params(key, latent_dim, obs_dim):
    """Deterministic re-implementation of the PyTorch __init__ (true_mat=None path)."""
    rand_mat = (jax.random.uniform(key, (latent_dim, obs_dim)) - 0.5) * 0.1 + 0.5
    rand_mat = rand_mat / jnp.sum(rand_mat, axis=0, keepdims=True)
    return jnp.log(rand_mat)  # stored parameter `mat`


def reference_forward(mat, x):
    """Pure-JAX reference for correctness check."""
    p = jnp.exp(mat)
    p = p / jnp.sum(p, axis=0, keepdims=True)
    return jnp.log(
        jnp.einsum("ux,dx->du", p, x, precision=jax.lax.Precision.HIGHEST)
    )


if __name__ == "__main__":
    latent_dim = 32   # U
    obs_dim = 16      # X
    batch = 8         # D

    key = jax.random.PRNGKey(0)
    k_mat, k_x, k_x2, k_x3 = jax.random.split(key, 4)

    mat = init_recog_matrix_params(k_mat, latent_dim, obs_dim)
    # observations: strictly positive so log() is finite (matches intended domain)
    x = jax.random.uniform(k_x, (batch, obs_dim), minval=0.1, maxval=1.0)

    out = jax.block_until_ready(recog_matrix_forward(mat, x))
    ref = reference_forward(mat, x)
    assert out.shape == (batch, latent_dim)
    assert jnp.allclose(out, ref, atol=1e-4, rtol=1e-4), "mismatch (single block)"

    # Batch not a multiple of the packing factor -> exercises pad + slice path.
    batch2 = 37
    x2 = jax.random.uniform(k_x2, (batch2, obs_dim), minval=0.1, maxval=1.0)
    out2 = jax.block_until_ready(recog_matrix_forward(mat, x2))
    ref2 = reference_forward(mat, x2)
    assert out2.shape == (batch2, latent_dim)
    assert jnp.allclose(out2, ref2, atol=1e-4, rtol=1e-4), "mismatch (padded batch)"

    # Small block_d -> multi-step grid with resident weights and a partial tail block.
    batch3 = 200
    x3 = jax.random.uniform(k_x3, (batch3, obs_dim), minval=0.1, maxval=1.0)
    out3 = jax.block_until_ready(recog_matrix_forward(mat, x3, block_d=64))
    ref3 = reference_forward(mat, x3)
    assert out3.shape == (batch3, latent_dim)
    assert jnp.allclose(out3, ref3, atol=1e-4, rtol=1e-4), "mismatch (tiled grid)"

    print("KERNEL_OK")
</pallas_src>

<mosaic_0001>
module attributes {stable_mosaic.version = 11 : i64} {
  func.func @_recog_matrix_kernel(%arg0: i32, %arg1: memref<128x256xf32, #tpu.memory_space<vmem>>, %arg2: memref<1x128xf32, #tpu.memory_space<vmem>>, %arg3: memref<1x256xf32, #tpu.memory_space<vmem>>) attributes {dimension_semantics = [#tpu.dimension_semantics<parallel>], iteration_bounds = array<i64: 1>, scalar_prefetch = 0 : i64, scratch_operands = 0 : i64, tpu.core_type = #tpu.core_type<tc>, window_params = [{pipeline_mode = #tpu.pipeline_mode<synchronous>, transform_indices = @transform_0, window_bounds = array<i64: 128, 256>}, {transform_indices = @transform_1, window_bounds = array<i64: 1, 128>}, {transform_indices = @transform_2, window_bounds = array<i64: 1, 256>}]} {
    %c0 = arith.constant 0 : index
    %c0_0 = arith.constant 0 : index
    %0 = vector.load %arg2[%c0, %c0_0] : memref<1x128xf32, #tpu.memory_space<vmem>>, vector<1x128xf32>
    %c0_1 = arith.constant 0 : index
    %c0_2 = arith.constant 0 : index
    %1 = vector.load %arg1[%c0_1, %c0_2] : memref<128x256xf32, #tpu.memory_space<vmem>>, vector<128x256xf32>
    %cst = arith.constant dense<0.000000e+00> : vector<1x256xf32>
    %2 = tpu.matmul %0, %1, %cst {dimension_numbers = #tpu.dot_dimension_numbers<[1], [0], [0], [1], [0, 0, 1, 1], [], []>} : vector<1x128xf32>, vector<128x256xf32>, vector<1x256xf32> -> vector<1x256xf32>
    %3 = math.log %2 : vector<1x256xf32>
    %c0_3 = arith.constant 0 : index
    %c0_4 = arith.constant 0 : index
    %4 = vector.load %arg3[%c0_3, %c0_4] : memref<1x256xf32, #tpu.memory_space<vmem>>, vector<1x256xf32>
    tpu.vector_store %arg3[%c0_3, %c0_4], %3 {strides = array<i32>} : memref<1x256xf32, #tpu.memory_space<vmem>>, vector<1x256xf32>,
    return
  }
  func.func @transform_0(%arg0: i32) -> (i32, i32) {
    %c0_i32 = arith.constant 0 : i32
    %c0_i32_0 = arith.constant 0 : i32
    %c0_i32_1 = arith.constant 0 : i32
    return %c0_i32, %c0_i32_0 : i32, i32
  }
  func.func @transform_1(%arg0: i32) -> (i32, i32) {
    %c0_i32 = arith.constant 0 : i32
    %c0_i32_0 = arith.constant 0 : i32
    return %arg0, %c0_i32 : i32, i32
  }
  func.func @transform_2(%arg0: i32) -> (i32, i32) {
    %c0_i32 = arith.constant 0 : i32
    %c0_i32_0 = arith.constant 0 : i32
    return %arg0, %c0_i32 : i32, i32
  }
}

</mosaic_0001>

<bundles_post_ra>
// kernel: tpu_custom_call.1
= control target key start
LH: loop header
LB: loop body
LE: loop exit
PB: predicated region body
PF: predicated region fallthrough
CT: control target
= control target key end

     0   :  { %7 = vsyncpa [#allocation3], 0  ;;  %s264_s0 = inlined_call_operand.hbm [shape: f32[128,256], index: 0, kind: input, shape index: {}]   ;;  %s265_s1 = inlined_call_operand.hbm [shape: f32[1,128], index: 1, kind: input, shape index: {}]   ;;  %s266_s2 = inlined_call_operand.hbm [shape: f32[1,256], index: 2, kind: output, shape index: {}]  }
   0x1   :  { %8 = vsyncpa [#allocation6], 0 }
   0x2   :  { %9 = vsyncpa [#allocation4], 0  ;;  %s14_s11 = sshll.u32 %s264_s0, 4  ;;  %s235_s12 = smov [#allocation2]   ;;  %s15_s11 = int_to_ptr.hbm [resolvable:$true] %s14_s11 }
   0x3   :  { %s16_s13 = sshll.u32 %s235_s12, 4  ;;  %s28_s16 = sshll.u32 %s265_s1, 4  ;;  %s17_s13 = int_to_ptr.vmem [resolvable:$true] %s16_s13  ;;  %s29_s16 = int_to_ptr.hbm [resolvable:$true] %s28_s16 }
   0x4   :  { %s236_s17 = smov 256   ;;  %s237_s18 = smov 16  }
   0x5   :  { %22 = dma.hbm_to_vmem [thread:$0]  %s15_s11, 4096, %s17_s13, [#allocation3], %s236_s17, %s236_s17, %s237_s18  }
   0x6   :  { %s238_s19 = smov [#allocation5]  }
   0x7   :  { %s30_s20 = sshll.u32 %s238_s19, 4  ;;  %s31_s20 = int_to_ptr.vmem [resolvable:$true] %s30_s20 }
   0x8   :  { %33 = dma.hbm_to_vmem [thread:$0]  %s29_s16, 16, %s31_s20, [#allocation6]  }
   0x9   :  { %229 = dma.done.wait [#allocation3], 4096  }
   0xa   :  { %230 = vsyncadd [#allocation3], 4294963200 }
   0xb   :  { %231 = dma.done.wait [#allocation6], 16  }
   0xc   :  { %232 = vsyncadd [#allocation6], 4294967280  ;;  %v74_v0 = vld [vmem:[#allocation2 + $0xf8] sm:$0xff]  ;;  %v73_v1 = vld [vmem:[#allocation2 + $0xf0] sm:$0xff]  ;;  %v125_v35 = vlaneseq  ;;  %s239_s0 = smov [#allocation7]   ;;  %s137_s23 = sshll.u32 %s266_s2, 4  ;;  %s138_s23 = int_to_ptr.hbm [resolvable:$true] %s137_s23 }
   0xd   :  { %v72_v2 = vld [vmem:[#allocation2 + $0xe8] sm:$0xff]  ;;  %95 = vmatpush.msra.mxu1 %v74_v0  ;;  %75 = vmatpush.msra.mxu0 %v73_v1  ;;  %v71_v3 = vld [vmem:[#allocation2 + $0xe0] sm:$0xff]  ;;  %v70_v4 = vld [vmem:[#allocation2 + $0xd8] sm:$0xff]  ;;  %s135_s1 = sshll.u32 %s239_s0, 4  ;;  %vm122_vm0 = vcmask 1040384   ;;  %s136_s1 = int_to_ptr.vmem [resolvable:$true] %s135_s1 }
   0xe   :  { %v69_v5 = vld [vmem:[#allocation2 + $0xd0] sm:$0xff]  ;;  %v68_v6 = vld [vmem:[#allocation2 + $0xc8] sm:$0xff]  ;;  %v67_v7 = vld [vmem:[#allocation2 + $0xc0] sm:$0xff]  ;;  %vm127_vm1 = vcmp.lt.s32.totalorder %v125_v35, 256 }
   0xf   :  { %96 = vmatpush.msra.mxu1 %v72_v2  ;;  %76 = vmatpush.msra.mxu0 %v71_v3  ;;  %v66_v8 = vld [vmem:[#allocation2 + $0xb8] sm:$0xff]  ;;  %v65_v9 = vld [vmem:[#allocation2 + $0xb0] sm:$0xff]  ;;  %v64_v10 = vld [vmem:[#allocation2 + $0xa8] sm:$0xff] }
  0x10   :  { %v63_v11 = vld [vmem:[#allocation2 + $0xa0] sm:$0xff]  ;;  %v62_v12 = vld [vmem:[#allocation2 + $0x98] sm:$0xff]  ;;  %v61_v13 = vld [vmem:[#allocation2 + $0x90] sm:$0xff] }
  0x11   :  { %97 = vmatpush.msra.mxu1 %v70_v4  ;;  %77 = vmatpush.msra.mxu0 %v69_v5  ;;  %v60_v14 = vld [vmem:[#allocation2 + $0x88] sm:$0xff]  ;;  %v59_v15 = vld [vmem:[#allocation2 + $0x80] sm:$0xff]  ;;  %v58_v16 = vld [vmem:[#allocation2 + $0x78] sm:$0xff] }
  0x12   :  { %v57_v17 = vld [vmem:[#allocation2 + $0x70] sm:$0xff]  ;;  %v56_v18 = vld [vmem:[#allocation2 + $0x68] sm:$0xff]  ;;  %v55_v19 = vld [vmem:[#allocation2 + $0x60] sm:$0xff] }
  0x13   :  { %98 = vmatpush.msra.mxu1 %v68_v6  ;;  %78 = vmatpush.msra.mxu0 %v67_v7  ;;  %v54_v20 = vld [vmem:[#allocation2 + $0x58] sm:$0xff]  ;;  %v53_v21 = vld [vmem:[#allocation2 + $0x50] sm:$0xff]  ;;  %v52_v22 = vld [vmem:[#allocation2 + $0x48] sm:$0xff] }
  0x14   :  { %v51_v23 = vld [vmem:[#allocation2 + $0x40] sm:$0xff]  ;;  %v50_v24 = vld [vmem:[#allocation2 + $0x38] sm:$0xff]  ;;  %v49_v25 = vld [vmem:[#allocation2 + $0x30] sm:$0xff] }
  0x15   :  { %99 = vmatpush.msra.mxu1 %v66_v8  ;;  %79 = vmatpush.msra.mxu0 %v65_v9  ;;  %v48_v26 = vld [vmem:[#allocation2 + $0x28] sm:$0xff]  ;;  %v47_v27 = vld [vmem:[#allocation2 + $0x20] sm:$0xff]  ;;  %v46_v28 = vld [vmem:[#allocation2 + $0x18] sm:$0xff] }
  0x16   :  { %v45_v29 = vld [vmem:[#allocation2 + $0x10] sm:$0xff]  ;;  %v44_v30 = vld [vmem:[#allocation2 + $0x8] sm:$0xff]  ;;  %v43_v31 = vld [vmem:[#allocation2] sm:$0xff] }
  0x17   :  { %100 = vmatpush.msra.mxu1 %v64_v10  ;;  %80 = vmatpush.msra.mxu0 %v63_v11  ;;  %v42_v32 = vld [vmem:[#allocation5] sm:$0x1] }
  0x19   :  { %101 = vmatpush.msra.mxu1 %v62_v12  ;;  %81 = vmatpush.msra.mxu0 %v61_v13 }
  0x1b   :  { %102 = vmatpush.msra.mxu1 %v60_v14  ;;  %82 = vmatpush.msra.mxu0 %v59_v15 }
  0x1d   :  { %103 = vmatpush.msra.mxu1 %v58_v16  ;;  %83 = vmatpush.msra.mxu0 %v57_v17 }
  0x1f   :  { %104 = vmatpush.msra.mxu1 %v56_v18  ;;  %84 = vmatpush.msra.mxu0 %v55_v19 }
  0x21   :  { %105 = vmatpush.msra.mxu1 %v54_v20  ;;  %85 = vmatpush.msra.mxu0 %v53_v21 }
  0x23   :  { %106 = vmatpush.msra.mxu1 %v52_v22  ;;  %86 = vmatpush.msra.mxu0 %v51_v23 }
  0x25   :  { %107 = vmatpush.msra.mxu1 %v50_v24  ;;  %87 = vmatpush.msra.mxu0 %v49_v25 }
  0x27   :  { %108 = vmatpush.msra.mxu1 %v48_v26  ;;  %88 = vmatpush.msra.mxu0 %v47_v27 }
  0x29   :  { %109 = vmatpush.msra.mxu1 %v46_v28  ;;  %89 = vmatpush.msra.mxu0 %v45_v29 }
  0x2b   :  { %110 = vmatpush.msra.mxu1 %v44_v30  ;;  %90 = vmatpush.msra.mxu0 %v43_v31 }
  0x2c   :  { %111 = vmatmul.f32.vlgmr.msra.gmra.mxu1 %v42_v32  ;;  %91 = vmatmul.f32.vlgmr.msra.gmra.mxu0 %v42_v32 }
  0xa9   :  { %v112_v33 = vpop.f32.mrf.mxu1  ;;  %v92_v34 = vpop.f32.mrf.mxu0 }
  0xaa   :  { %153 = vlog2.f32 %v112_v33 }
  0xab   :  { %155 = vlog2.f32 %v92_v34 }
  0xb0   :  { %v154_v36 = vpop.eup %153 }
  0xb1   :  { %v156_v37 = vpop.eup %155  ;;  %v118_v38 = vmul.f32 0.6931472, %v154_v36 }
  0xb2   :  { %v116_v39 = vmul.f32 0.6931472, %v156_v37 }
  0xb3   :  { %v121_v40 = vrot.slane %v118_v38, 7 }
  0xb5   :  { %v123_v41 = vsel %vm122_vm0, %v116_v39, %v121_v40 }
  0xb6   :  { %129 = vst.msk [vmem:[#allocation7] sm:$0x3] %vm127_vm1, %v123_v41 }
  0xb7   :  { %140 = dma.vmem_to_hbm [thread:$0]  %s136_s1, 32, %s138_s23, [#allocation4]  }
  0xb8   :  { %233 = dma.done.wait [#allocation4], 32  }
  0xb9   :  { %234 = vsyncadd [#allocation4], 4294967264 }
  0xba   :  { %145 = vsyncpa [#allocation3], 1 }
  0xbb   :  { %146 = vsyncpa [#allocation6], 1 }
  0xbc   :  { %147 = vsyncpa [#allocation4], 1 }

</bundles_post_ra>
